<compile_context>
chip_gen: v6e
topology: v6e:2x2x1
jax: 0.10.0
libtpu: 0.0.40
codegen_flags: <defaults>
</compile_context>

<pallas_src>
import jax
import jax.numpy as jnp
from jax.experimental import pallas as pl
from jax.experimental.pallas import tpu as pltpu


def _round_up(x, m):
    return ((x + m - 1) // m) * m


def _cdiv(a, b):
    return (a + b - 1) // b


def _make_kernel(ts, seq_len, seq_padded):
    """Builds the kernel body with static tile size / true sequence length."""

    def kernel(x_ref, w1_ref, b1_ref, o_ref):
        s = pl.program_id(1)

        # ---- init the running signed abs-max accumulator (the output block,
        #      resident across the whole sequence axis) -----------------------
        @pl.when(s == 0)
        def _():
            o_ref[...] = jnp.zeros_like(o_ref)

        # ---- pre_pooling_linear on this (ts, Dp) tile: bf16 MXU, f32 acc ----
        h = jnp.dot(x_ref[...], w1_ref[...], preferred_element_type=jnp.float32)
        h = h + b1_ref[...]                                   # (ts, Dp) f32

        # ---- running abs-max pooling over this tile's sequence rows ---------
        # Signed abs-max via max/min: 2 sublane reductions + selects.
        # Tie-break: on an exact |+a| == |-a| tie within a tile the positive
        # value wins (torch argmax keeps the first occurrence); across tiles
        # the strict '>' keeps the earlier tile.
        def update(h_tile):
            mx = jnp.max(h_tile, axis=0, keepdims=True)       # (1, Dp)
            mn = jnp.min(h_tile, axis=0, keepdims=True)       # (1, Dp)
            tile_abs = jnp.maximum(mx, -mn)[None]             # (1, 1, Dp)
            tile_val = jnp.where(mx >= -mn, mx, mn)[None]     # (1, 1, Dp)
            cur = o_ref[...]
            o_ref[...] = jnp.where(tile_abs > jnp.abs(cur), tile_val, cur)

        if seq_padded:
            last = pl.num_programs(1) - 1

            @pl.when(s != last)
            def _():
                update(h)

            @pl.when(s == last)
            def _():
                # Only the last tile contains padded rows; zero them so they
                # can never win the abs-max (real |h| >= 0 beats/ties 0).
                row = jax.lax.broadcasted_iota(jnp.int32, (ts, 1), 0)
                update(jnp.where(s * ts + row < seq_len, h, 0.0))
        else:
            update(h)

    return kernel


def naive_pooling_classifier(x, w1, b1, w2, b2, *, ts=None,
                             compute_dtype=jnp.bfloat16):
    """Forward pass of NaivePoolingClassifier.

    x: (B, S, D); w1: (D, D); b1: (D,); w2: (D, C); b2: (C,).
    Returns (B, C) float32 log-probabilities.
    """
    B, S, D = x.shape
    C = w2.shape[1]
    assert w1.shape == (D, D) and b1.shape == (D,)
    assert w2.shape == (D, C) and b2.shape == (C,)

    # Lane-dense padded embedding dim (multiple of 128 on the last dim).
    Dp = _round_up(D, 128)

    # Padding-aware sequence tile: big tiles amortize the ~0.35 us/step grid
    # overhead; picking ts ~= cdiv(S, cdiv(S, target)) avoids rounding S up by
    # a nearly-full extra tile (e.g. S=257 no longer pads to 512).
    if ts is None:
        target = 512
        n_tiles = max(1, _cdiv(S, target))
        ts = _round_up(_cdiv(S, n_tiles), 8)
    assert ts % 8 == 0 and ts > 0
    n_s = _cdiv(S, ts)
    S_pad = n_s * ts

    # Operands: bf16 x / W1 (f32 accumulation happens on the MXU); biases and
    # the pooled accumulator stay f32.  Feature padding is exact zeros, so it
    # propagates as zeros through the linear layer and the pooling.
    xp = jnp.pad(x, ((0, 0), (0, S_pad - S), (0, Dp - D))).astype(compute_dtype)
    xp = xp.reshape(B * S_pad, Dp)            # collapse (B, S) at the boundary
    w1p = jnp.pad(w1, ((0, Dp - D), (0, Dp - D))).astype(compute_dtype)
    b1p = jnp.pad(b1, (0, Dp - D)).astype(jnp.float32).reshape(1, Dp)

    x_bpe = jnp.dtype(compute_dtype).itemsize

    # Single-buffer the VMEM-resident W1 (constant block index -> fetched once)
    # when the extra copy would cost meaningful VMEM; keep the default double
    # buffer for small weights.
    w1_spec_kwargs = {}
    w1_bufs = 2
    if Dp * Dp * x_bpe >= (4 << 20):
        w1_spec_kwargs["pipeline_mode"] = pl.Buffered(1)
        w1_bufs = 1
    # TODO(synk): add a K-axis grid split for W1 (x tile (ts, tk), W1 tile
    # (tk, Dp), f32 h accumulator) once w1_bufs*Dp*Dp*bpe + x tiles exceed
    # ~48 MiB, so very large D still fits v7x's 64 MiB per-TensorCore VMEM.

    vmem_est = (2 * ts * Dp * x_bpe               # x tile, double buffered
                + w1_bufs * Dp * Dp * x_bpe       # resident W1
                + 2 * Dp * 4                      # b1
                + 2 * Dp * 4                      # pooled output block
                + 3 * ts * Dp * 4)                # f32 h temporaries

    # Generation-aware scoped-VMEM limit (v5e default 16 MiB would otherwise
    # reject mid-size configs; cap below physical capacity: 64 MiB/TC on v7x).
    try:
        vmem_cap = int(pltpu.get_tpu_info().vmem_capacity_bytes)
    except Exception:
        vmem_cap = 64 * 1024 * 1024               # conservative fallback (v7x)
    vmem_limit = int(min(max(vmem_est * 5 // 4, 32 << 20), vmem_cap * 85 // 100))

    kernel = _make_kernel(ts, S, S_pad != S)

    pooled = pl.pallas_call(
        kernel,
        out_shape=jax.ShapeDtypeStruct((B, 1, Dp), jnp.float32),
        grid_spec=pltpu.PrefetchScalarGridSpec(
            num_scalar_prefetch=0,
            grid=(B, n_s),                  # (batch: parallel, seq: reduction)
            in_specs=[
                pl.BlockSpec((ts, Dp), lambda b, s: (b * n_s + s, 0)),  # x tile
                pl.BlockSpec((Dp, Dp), lambda b, s: (0, 0),
                             **w1_spec_kwargs),                         # W1
                pl.BlockSpec((1, Dp), lambda b, s: (0, 0)),             # b1
            ],
            out_specs=pl.BlockSpec((1, 1, Dp), lambda b, s: (b, 0, 0)),
        ),
        compiler_params=pltpu.CompilerParams(
            dimension_semantics=("parallel", "arbitrary"),
            vmem_limit_bytes=vmem_limit,
        ),
        cost_estimate=pl.CostEstimate(
            flops=2 * B * S_pad * Dp * Dp,
            transcendentals=0,
            bytes_accessed=(xp.size * xp.dtype.itemsize
                            + w1p.size * w1p.dtype.itemsize
                            + b1p.size * 4
                            + B * Dp * 4),
        ),
    )(xp, w1p, b1p)

    # Tiny per-batch classifier + log_softmax: a single well-shaped
    # (B, D) x (D, C) GEMM in plain XLA (keeps W2/b2 out of kernel VMEM).
    pooled = pooled[:, 0, :D]                                     # (B, D) f32
    logits = pooled @ w2.astype(jnp.float32) + b2.astype(jnp.float32)
    return jax.nn.log_softmax(logits, axis=-1)


def _reference(x, w1, b1, w2, b2, compute_dtype=jnp.bfloat16):
    """Pure-JAX reference with matching operand precision (sanity check)."""
    h = jnp.einsum("bsd,de->bse", x.astype(compute_dtype),
                   w1.astype(compute_dtype),
                   preferred_element_type=jnp.float32) + b1
    idx = jnp.argmax(jnp.abs(h), axis=1)                          # (B, D)
    pooled = jnp.take_along_axis(h, idx[:, None, :], axis=1)[:, 0, :]
    logits = pooled @ w2 + b2
    return jax.nn.log_softmax(logits, axis=1)


if __name__ == "__main__":
    B, S, D, C = 2, 16, 32, 4   # batch, seq, embedding_dim, num_classes

    key = jax.random.PRNGKey(0)
    kx, kw1, kb1, kw2, kb2 = jax.random.split(key, 5)

    x = jax.random.normal(kx, (B, S, D), dtype=jnp.float32)
    # Deterministic synthetic parameters (shapes from nn.Linear in __init__).
    w1 = jax.random.normal(kw1, (D, D), dtype=jnp.float32) * (1.0 / jnp.sqrt(D))
    b1 = jax.random.normal(kb1, (D,), dtype=jnp.float32) * 0.02
    w2 = jax.random.normal(kw2, (D, C), dtype=jnp.float32) * (1.0 / jnp.sqrt(D))
    b2 = jax.random.normal(kb2, (C,), dtype=jnp.float32) * 0.02

    # ts=8 -> 2 sequence tiles per batch element: exercises the running
    # accumulator init / update path.  The reference uses the same bf16
    # operand precision (f32 accumulation), so tolerances stay tight.
    out = naive_pooling_classifier(x, w1, b1, w2, b2, ts=8)
    out = jax.block_until_ready(out)
    ref = _reference(x, w1, b1, w2, b2)
    assert out.shape == (B, C)
    assert jnp.allclose(out, ref, atol=2e-3, rtol=2e-3), (out, ref)

    # Ragged sequence (S=13 with ts=8): exercises the gated last-tile padding
    # mask.
    x2 = x[:, :13, :]
    out2 = naive_pooling_classifier(x2, w1, b1, w2, b2, ts=8)
    out2 = jax.block_until_ready(out2)
    ref2 = _reference(x2, w1, b1, w2, b2)
    assert out2.shape == (B, C)
    assert jnp.allclose(out2, ref2, atol=2e-3, rtol=2e-3), (out2, ref2)

    print("KERNEL_OK")
</pallas_src>

<mosaic_0001>
module attributes {stable_mosaic.version = 11 : i64} {
  func.func @kernel(%arg0: i32, %arg1: i32, %arg2: memref<8x128xbf16, #tpu.memory_space<vmem>>, %arg3: memref<128x128xbf16, #tpu.memory_space<vmem>>, %arg4: memref<1x128xf32, #tpu.memory_space<vmem>>, %arg5: memref<1x1x128xf32, #tpu.memory_space<vmem>>) attributes {dimension_semantics = [#tpu.dimension_semantics<parallel>, #tpu.dimension_semantics<arbitrary>], iteration_bounds = array<i64: 2, 2>, scalar_prefetch = 0 : i64, scratch_operands = 0 : i64, tpu.core_type = #tpu.core_type<tc>, window_params = [{transform_indices = @transform_0, window_bounds = array<i64: 8, 128>}, {pipeline_mode = #tpu.pipeline_mode<synchronous>, transform_indices = @transform_1, window_bounds = array<i64: 128, 128>}, {pipeline_mode = #tpu.pipeline_mode<synchronous>, transform_indices = @transform_2, window_bounds = array<i64: 1, 128>}, {transform_indices = @transform_3, window_bounds = array<i64: 1, 1, 128>}]} {
    %c0_i32 = arith.constant 0 : i32
    %0 = arith.cmpi eq, %arg1, %c0_i32 : i32
    %1 = arith.extui %0 : i1 to i32
    %c0_i32_0 = arith.constant 0 : i32
    %2 = arith.cmpi ne, %1, %c0_i32_0 : i32
    scf.if %2 {
      %cst_16 = arith.constant 0.000000e+00 : f32
      %27 = vector.broadcast %cst_16 : f32 to vector<1x1x128xf32>
      %c0_17 = arith.constant 0 : index
      %c0_18 = arith.constant 0 : index
      %c0_19 = arith.constant 0 : index
      %28 = vector.load %arg5[%c0_17, %c0_18, %c0_19] : memref<1x1x128xf32, #tpu.memory_space<vmem>>, vector<1x1x128xf32>
      tpu.vector_store %arg5[%c0_17, %c0_18, %c0_19], %27 {strides = array<i32>} : memref<1x1x128xf32, #tpu.memory_space<vmem>>, vector<1x1x128xf32>,
    } else {
    }
    %c0 = arith.constant 0 : index
    %c0_1 = arith.constant 0 : index
    %3 = vector.load %arg2[%c0, %c0_1] : memref<8x128xbf16, #tpu.memory_space<vmem>>, vector<8x128xbf16>
    %c0_2 = arith.constant 0 : index
    %c0_3 = arith.constant 0 : index
    %4 = vector.load %arg3[%c0_2, %c0_3] : memref<128x128xbf16, #tpu.memory_space<vmem>>, vector<128x128xbf16>
    %cst = arith.constant dense<0.000000e+00> : vector<8x128xf32>
    %5 = tpu.matmul %3, %4, %cst {dimension_numbers = #tpu.dot_dimension_numbers<[1], [0], [0], [1], [0, 0, 1, 1], [], []>} : vector<8x128xbf16>, vector<128x128xbf16>, vector<8x128xf32> -> vector<8x128xf32>
    %c0_4 = arith.constant 0 : index
    %c0_5 = arith.constant 0 : index
    %6 = vector.load %arg4[%c0_4, %c0_5] : memref<1x128xf32, #tpu.memory_space<vmem>>, vector<1x128xf32>
    %7 = vector.broadcast %6 : vector<1x128xf32> to vector<8x128xf32>
    %8 = arith.addf %5, %7 : vector<8x128xf32>
    %cst_6 = arith.constant dense<0xFF800000> : vector<128xf32>
    %9 = vector.multi_reduction <maximumf>, %8, %cst_6 [0] : vector<8x128xf32> to vector<128xf32>
    %10 = vector.shape_cast %9 : vector<128xf32> to vector<1x128xf32>
    %cst_7 = arith.constant dense<0x7F800000> : vector<128xf32>
    %11 = vector.multi_reduction <minimumf>, %8, %cst_7 [0] : vector<8x128xf32> to vector<128xf32>
    %12 = vector.shape_cast %11 : vector<128xf32> to vector<1x128xf32>
    %cst_8 = arith.constant 0.000000e+00 : f32
    %13 = vector.broadcast %cst_8 : f32 to vector<1x128xf32>
    %14 = arith.subf %13, %12 : vector<1x128xf32>
    %15 = arith.maximumf %10, %14 : vector<1x128xf32>
    %16 = vector.shape_cast %15 : vector<1x128xf32> to vector<1x1x128xf32>
    %cst_9 = arith.constant 0.000000e+00 : f32
    %17 = vector.broadcast %cst_9 : f32 to vector<1x128xf32>
    %18 = arith.subf %17, %12 : vector<1x128xf32>
    %19 = arith.cmpf oge, %10, %18 : vector<1x128xf32>
    %20 = arith.select %19, %10, %12 : vector<1x128xi1>, vector<1x128xf32>
    %21 = vector.shape_cast %20 : vector<1x128xf32> to vector<1x1x128xf32>
    %c0_10 = arith.constant 0 : index
    %c0_11 = arith.constant 0 : index
    %c0_12 = arith.constant 0 : index
    %22 = vector.load %arg5[%c0_10, %c0_11, %c0_12] : memref<1x1x128xf32, #tpu.memory_space<vmem>>, vector<1x1x128xf32>
    %23 = math.absf %22 : vector<1x1x128xf32>
    %24 = arith.cmpf ogt, %16, %23 : vector<1x1x128xf32>
    %25 = arith.select %24, %21, %22 : vector<1x1x128xi1>, vector<1x1x128xf32>
    %c0_13 = arith.constant 0 : index
    %c0_14 = arith.constant 0 : index
    %c0_15 = arith.constant 0 : index
    %26 = vector.load %arg5[%c0_13, %c0_14, %c0_15] : memref<1x1x128xf32, #tpu.memory_space<vmem>>, vector<1x1x128xf32>
    tpu.vector_store %arg5[%c0_13, %c0_14, %c0_15], %25 {strides = array<i32>} : memref<1x1x128xf32, #tpu.memory_space<vmem>>, vector<1x1x128xf32>,
    return
  }
  func.func @transform_0(%arg0: i32, %arg1: i32) -> (i32, i32) {
    %c2_i32 = arith.constant 2 : i32
    %0 = arith.muli %arg0, %c2_i32 : i32
    %1 = arith.addi %0, %arg1 : i32
    %c0_i32 = arith.constant 0 : i32
    %c0_i32_0 = arith.constant 0 : i32
    return %1, %c0_i32 : i32, i32
  }
  func.func @transform_1(%arg0: i32, %arg1: i32) -> (i32, i32) {
    %c0_i32 = arith.constant 0 : i32
    %c0_i32_0 = arith.constant 0 : i32
    %c0_i32_1 = arith.constant 0 : i32
    return %c0_i32, %c0_i32_0 : i32, i32
  }
  func.func @transform_2(%arg0: i32, %arg1: i32) -> (i32, i32) {
    %c0_i32 = arith.constant 0 : i32
    %c0_i32_0 = arith.constant 0 : i32
    %c0_i32_1 = arith.constant 0 : i32
    return %c0_i32, %c0_i32_0 : i32, i32
  }
  func.func @transform_3(%arg0: i32, %arg1: i32) -> (i32, i32, i32) {
    %c0_i32 = arith.constant 0 : i32
    %c0_i32_0 = arith.constant 0 : i32
    %c0_i32_1 = arith.constant 0 : i32
    return %arg0, %c0_i32, %c0_i32_0 : i32, i32, i32
  }
}

</mosaic_0001>

<bundles_post_ra>
// kernel: tpu_custom_call.1
= control target key start
LH: loop header
LB: loop body
LE: loop exit
PB: predicated region body
PF: predicated region fallthrough
CT: control target
= control target key end

     0   :  { %s1076_s0 = inlined_call_operand.hbm [shape: bf16[32,128], index: 0, kind: input, shape index: {}]   ;;  %s1077_s1 = inlined_call_operand.hbm [shape: bf16[128,128], index: 1, kind: input, shape index: {}]   ;;  %s1078_s2 = inlined_call_operand.vmem [shape: f32[1,128], index: 2, kind: input, shape index: {}]   ;;  %s1079_s3 = inlined_call_operand.hbm [shape: f32[2,1,128], index: 3, kind: output, shape index: {}]  }
   0x1   :  { %1087 = sst [smem:[#allocation17_spill]] %s1077_s1 }
   0x2   :  { %1088 = sst [smem:[#allocation18_spill]] %s1078_s2 }
   0x3   :  { %1089 = sst [smem:[#allocation19_spill]] %s1079_s3 }
   0x4   :  { %8 = vsyncpa [#allocation3], 0 }
   0x5   :  { %10 = vsyncpa [#allocation3 + $0x1], 0 }
   0x6   :  { %11 = vsyncpa [#allocation6], 0 }
   0x7   :  { %12 = vsyncpa [#allocation4], 0 }
   0x8   :  { %14 = vsyncpa [#allocation4 + $0x1], 0  ;;  %s850_s12 = smov 0   ;;  %s852_s13 = smov 0  }
   0x9   :  { %s854_s14 = smov 0   ;;  %s856_s15 = smov 0  }
   0xa   :  { %s858_s16 = smov 0   ;;  %s860_s17 = smov 0  }
   0xb   :  { %s862_s18 = smov 0   ;;  %s864_s19 = smov 0  }
   0xc   :  { %s866_s20 = smov 0   ;;  %s868_s21 = smov 0  }
   0xd   :  { %s870_s22 = smov 0  }
   0xe LB: > { %1090 = sst [smem:[#allocation11_spill]] %s780_s12  ;;  %s461_s23 = sadd.s32 4294967295, %s820_s22   ;;  %s820_s22 = sphi %s870_s22, %s20_s22   ;;  %s816_s21 = sphi %s868_s21, %s1122_s21   ;;  %s812_s20 = sphi %s866_s20, %s1121_s20   ;;  %s808_s19 = sphi %s864_s19, %s1120_s19   ;;  %s804_s18 = sphi %s862_s18, %s1113_s18   ;;  %s800_s17 = sphi %s860_s17, %s1119_s17   ;;  %s796_s16 = sphi %s858_s16, %s1118_s16   ;;  %s792_s15 = sphi %s856_s15, %s1117_s15   ;;  %s788_s14 = sphi %s854_s14, %s1116_s14   ;;  %s784_s13 = sphi %s852_s13, %s1115_s13   ;;  %s780_s12 = sphi %s850_s12, %s1114_s12  }
   0xf   : > { %1091 = sst [smem:[#allocation12_spill]] %s804_s18  ;;  %s462_s24 = sadd.s32 4294967294, %s820_s22  }
  0x10   : > { %1092 = sst [smem:[#allocation13_spill]] %s808_s19  ;;  %p56_p0 = scmp.ne.s32.totalorder %s796_s16, %s792_s15 }
  0x11   : > { %1093 = sst [smem:[#allocation14_spill]] %s812_s20  ;;  %p906_p1 = scmp.eq.s32.totalorder %s461_s23, 0 }
  0x12   : > { %p121_p2 = scmp.ne.s32.totalorder %s788_s14, %s784_s13  ;;  %p122_p3 = scmp.eq.s32.totalorder %s461_s23, 3 }
  0x13   : > { %p914_p4 = por %p906_p1, %p56_p0  ;;  %p127_p5 = scmp.ne.s32.totalorder %s784_s13, %s780_s12 }
  0x14   : > { %p920_p6 = por %p122_p3, %p121_p2  ;;  %p128_p7 = scmp.eq.s32.totalorder %s462_s24, 3 }
  0x15   : > { %p465_p8 = scmp.ge.s32.totalorder %s820_s22, 1  ;;  %p135_p9 = scmp.lt.s32.totalorder %s820_s22, 5 }
  0x16   : > { %s1096_s27 = scalar_select %p920_p6, 1, 0 }
  0x17   : > { %p926_p10 = por %p128_p7, %p127_p5  ;;  %p930_p11 = pnand %p465_p8, %p135_p9 }
  0x18   : > { %1097 = sst [smem:[#allocation15_spill]] %s1096_s27  ;;  %s822_s30 = smov [#allocation5]  }
  0x19   : > { %s1098_s28 = scalar_select %p926_p10, 1, 0 }
  0x1a   : > { %s147_s4 = sshll.u32 %s822_s30, 4  ;;  %p524_p12 = pneg %p930_p11  ;;  %s148_s4 = int_to_ptr.vmem [resolvable:$true] %s147_s4 }
  0x1b   : > { %1099 = sst [smem:[#allocation16_spill]] %s1098_s28  ;;  %s653_s5 = scalar_lea.vmem %s148_s4, 1024 }
  0x1c   : > { %p525_p13 = pnand %p524_p12, %p906_p1  ;;  %p654_p2 = scmp.ne.s32.totalorder %s148_s4, %s653_s5 }
  0x1d   : > { %p661_p7 = scmp.lt.s32.totalorder %s148_s4, %s148_s4  ;;  %p662_p6 = scmp.lt.s32.totalorder %s653_s5, %s653_s5 }
  0x1e   : > { %p644_p0 = pneg %p525_p13 }
  0x1f   : > { %p663_p10 = por %p662_p6, %p661_p7 }
  0x20   : > { %p656_p3 = pnand %p654_p2, %p644_p0 }
  0x22   : > { %p657_p5 = pneg %p656_p3 }
  0x24   : > { %p664_p8 = pnand %p663_p10, %p657_p5 }
  0x26   : > { %667 = shalt.err (!%p664_p8)
}
  0x27   : > { %s823_s6 = smov 64   ;;  %s824_s7 = smov 4  }
  0x28   : > { %s1101_s1 = sld [smem:[#allocation17_spill]]  ;;  %s29_s10 = sadd.s32 1, %s812_s20 }
  0x29   : > { %s32_s11 = sadd.s32 1, %s816_s21  ;;  %p30_p6 = scmp.ge.s32.totalorder %s29_s10, 2 }
  0x2a   : > { %s463_s15 = sshll.u32 %s816_s21, 1  ;;  %s43_s24 = sadd.s32 1, %s800_s17 }
  0x2b   : > { %s37_s23 = sadd.s32 %s812_s20, %s463_s15  ;;  %s1124_s10 = smov (%p30_p6, %s29_s10), 0 }
  0x2c   : > { %s1126_s11 = smov (!%p30_p6, %s32_s11), %s816_s21  ;;  %p50_p9 = scmp.ne.s32.totalorder %s800_s17, %s796_s16 }
  0x2d   : > { %p51_p10 = scmp.eq.s32.totalorder %s820_s22, 0  ;;  %p34_p12 = scmp.ge.s32.totalorder %s1126_s11, 2 }
  0x2e   : > { %527 = dma.hbm_to_vmem [thread:$0]  (!%p525_p13), %s1101_s1, 1024, %s148_s4, [#allocation6], %s823_s6, %s823_s6, %s824_s7  }
  0x2f   : > { %s111_s30 = sadd.s32 1, %s788_s14  ;;  %p953_p0 = por %p51_p10, %p50_p9 }
  0x30   : > { %p537_p13 = scmp.lt.s32.totalorder %s820_s22, 4  ;;  %s1128_s11 = smov (%p34_p12, %s1126_s11), 0 }
  0x31   : > { %s164_s5 = sand.u32 1, %s800_s17   ;;  %s470_s6 = sshll.u32 %s37_s23, 6 }
  0x32   : > { %s464_s7 = sshll.u32 %s1128_s11, 1  ;;  %s108_s8 = ssub.s32 %s816_s21, %s1128_s11 }
  0x33   : > { %s39_s9 = sadd.s32 %s464_s7, %s1124_s10  ;;  %p109_p2 = scmp.eq.s32.totalorder %s108_s8, 0 }
  0x34   : > { %s40_s15 = ssub.s32 %s37_s23, %s39_s9  ;;  %s468_s1 = sshll.u32 %s164_s5, 2 }
  0x35   : > { %p41_p3 = scmp.eq.s32.totalorder %s40_s15, 0  ;;  %s175_s27 = scalar_lea.hbm %s1076_s0, %s470_s6 }
  0x36   : > { %s966_s20 = scalar_select %p109_p2, %s788_s14, %s111_s30  }
  0x37   : > { %s969_s28 = scalar_select %p41_p3, %s800_s17, %s43_s24  }
  0x38   : > { %s168_s19 = scalar_lea.vmem [#allocation2], %s468_s1  ;;  %p978_p5 = pnand %p537_p13, %p953_p0 }
  0x39   : > { %s177_s2 = sshll.u32 %s168_s19, 4  ;;  %s165_s23 = scalar_lea.sflag [#allocation3], %s164_s5  ;;  %s178_s2 = int_to_ptr.vmem [resolvable:$true] %s177_s2 }
  0x3a   : > { %p670_p7 = pneg %p978_p5  ;;  %s681_s30 = scalar_lea.vmem %s178_s2, 64 }
  0x3b   : > { %p682_p8 = scmp.ne.s32.totalorder %s178_s2, %s681_s30  ;;  %s825_s24 = smov [#allocation2]  }
  0x3c   : > { %s686_s3 = sshll.u32 %s825_s24, 4  ;;  %s687_s3 = int_to_ptr.vmem [resolvable:$false] %s686_s3 }
  0x3d   : > { %p684_p6 = pnand %p682_p8, %p670_p7  ;;  %s688_s1 = scalar_lea.vmem %s687_s3, 128 }
  0x3e   : > { %p689_p10 = scmp.lt.s32.totalorder %s178_s2, %s687_s3  ;;  %p690_p12 = scmp.lt.s32.totalorder %s688_s1, %s681_s30 }
  0x3f   : > { %p685_p9 = pneg %p684_p6 }
  0x40   : > { %p691_p2 = por %p690_p12, %p689_p10 }
  0x42   : > { %p692_p0 = pnand %p691_p2, %p685_p9 }
  0x44   : > { %695 = shalt.err (!%p692_p0)
}
  0x45   : > { %531 = dma.hbm_to_vmem [thread:$0]  (!%p978_p5), %s175_s27, 64, %s178_s2, %s165_s23  }
  0x46   : > { %186 = sbr.rel (%p930_p11) target bundleno = 352 (0x160), region = 32  ;;  %s188_s12 = sand.u32 (!%p930_p11), 1, %s796_s16  }
  0x47   : > { %s989_s19 = sshll.u32 (!%p930_p11), %s188_s12, 2  ;;  %s189_s4 = scalar_lea.sflag (!%p930_p11), [#allocation3], %s188_s12 }
  0x48   : > { %s192_s5 = scalar_lea.vmem (!%p930_p11), [#allocation2], %s989_s19 }
  0x4b   : > { %767 = dma.done.wait (%p914_p4), %s189_s4, 64  }
  0x4c   : > { %769 = vsyncadd (%p914_p4), %s189_s4, 4294967232 }
  0x4d   : > { %771 = dma.done.wait (%p906_p1), [#allocation6], 1024  }
  0x4e   : > { %773 = vsyncadd (%p906_p1), [#allocation6], 4294966272  ;;  %s216_s2 = sand.u32 1, %s784_s13   ;;  %s1104_s27 = sld [smem:[#allocation12_spill]] }
  0x4f   : > { %s1003_s18 = scalar_lea.vmem [#allocation7], %s216_s2 }
  0x54   : > { %p474_p11 = scmp.ne.s32.totalorder %s1104_s27, 0 }
  0x56   : > { %224 = sbr.rel (%p474_p11) target bundleno = 93 (0x5d), region = 44 }
  0x5b   : > { %v826_v0 = vmov 0.0  }
  0x5c   : > { %225 = vst [vmem:[%s1003_s18] sm:$0x1] %v826_v0 }
  0x5d PF: > { %v634_v1 = vld [vmem:[#allocation5 + $0x38] sm:$0xff]   ;;  %v827_v2 = vmov 0.0   ;;  %v635_v3 = vld [vmem:[#allocation5 + $0x30] sm:$0xff]   ;;  %vm828_vm0 = vmmov 0   ;;  %v636_v4 = vld [vmem:[#allocation5 + $0x28] sm:$0xff]   ;;  %s1105_s29 = sld [smem:[#allocation18_spill]] }
  0x5e   : > { %496 = vmatprep.subr.bf16.mxu0 %v827_v2  ;;  %512 = vmatprep.mubr.msk.bf16.mxu0 %vm828_vm0, %v827_v2  ;;  %v637_v5 = vld [vmem:[#allocation5 + $0x20] sm:$0xff]   ;;  %v638_v6 = vld [vmem:[#allocation5 + $0x18] sm:$0xff]   ;;  %v639_v7 = vld [vmem:[#allocation5 + $0x10] sm:$0xff]   ;;  %s1106_s6 = sld [smem:[#allocation13_spill]]  ;;  %s372_s9 = sshll.u32 %s1003_s18, 4  ;;  %s373_s9 = int_to_ptr.vmem [resolvable:$true] %s372_s9 }
  0x5f   : > { %497 = vmatpush3.bf16.msra.mxu0 %v634_v1  ;;  %v640_v8 = vld [vmem:[#allocation5 + $0x8] sm:$0xff]   ;;  %v641_v9 = vld [vmem:[#allocation5] sm:$0xff]   ;;  %v226_v10 = vld [vmem:[%s192_s5] sm:$0xf]  ;;  %s1107_s7 = sld [smem:[#allocation15_spill]]  ;;  %s360_s3 = scalar_lea.sflag [#allocation4], %s216_s2 }
  0x60   : > { %498 = vmatprep.subr.bf16.mxu0 %v827_v2  ;;  %s1108_s30 = sld [smem:[#allocation19_spill]]  ;;  %s696_s1 = scalar_lea.vmem %s373_s9, 16 }
  0x61   : > { %p697_p1 = scmp.ne.s32.totalorder %s373_s9, %s696_s1  ;;  %s829_s12 = smov [#allocation7]  }
  0x62   : > { %s700_s19 = sshll.u32 %s829_s12, 4  ;;  %s701_s19 = int_to_ptr.vmem [resolvable:$false] %s700_s19 }
  0x63   : > { %499 = vmatpush3.bf16.msra.mxu0 %v635_v3  ;;  %v475_v11 = vld [vmem:[%s1105_s29] ss:$0 sm:$0xff]  ;;  %s702_s4 = scalar_lea.vmem %s701_s19, 32  ;;  %p703_p5 = scmp.lt.s32.totalorder %s373_s9, %s701_s19 }
  0x64   : > { %500 = vmatprep.subr.bf16.mxu0 %v827_v2  ;;  %v354_v26 = vld [vmem:[%s1003_s18] sm:$0x1]  ;;  %s484_s8 = sshll.u32 %s1106_s6, 4  ;;  %p704_p7 = scmp.lt.s32.totalorder %s702_s4, %s696_s1 }
  0x65   : > { %v355_v30 = vand.u32 2147483647, %v354_v26  ;;  %p1109_p4 = scmp.ne.s32.totalorder %s1107_s7, 0 }
  0x66   : > { %s1018_s24 = scalar_lea.hbm %s1108_s30, %s484_s8  ;;  %p705_p8 = por %p704_p7, %p703_p5 }
  0x67   : > { %501 = vmatpush3.bf16.msra.mxu0 %v636_v4  ;;  %p698_p13 = pnand %p697_p1, %p1109_p4 }
  0x68   : > { %502 = vmatprep.subr.bf16.mxu0 %v827_v2 }
  0x69   : > { %p699_p3 = pneg %p698_p13 }
  0x6b   : > { %503 = vmatpush3.bf16.msra.mxu0 %v637_v5  ;;  %p706_p6 = pnand %p705_p8, %p699_p3 }
  0x6c   : > { %504 = vmatprep.subr.bf16.mxu0 %v827_v2 }
  0x6f   : > { %505 = vmatpush3.bf16.msra.mxu0 %v638_v6 }
  0x70   : > { %506 = vmatprep.subr.bf16.mxu0 %v827_v2 }
  0x73   : > { %507 = vmatpush3.bf16.msra.mxu0 %v639_v7 }
  0x74   : > { %508 = vmatprep.subr.bf16.mxu0 %v827_v2 }
  0x77   : > { %509 = vmatpush3.bf16.msra.mxu0 %v640_v8 }
  0x78   : > { %510 = vmatprep.subr.bf16.mxu0 %v827_v2 }
  0x7b   : > { %511 = vmatpush3.bf16.msra.mxu0 %v641_v9 }
  0x7e   : > { %513 = vmatmul.mubr.bf16.vlgmr.msra.gmra.mxu0 %v226_v10 }
 0x13e   : > { %v332_v12 = vpop.f32.mrf.mxu0 }
 0x13f   : > { %v333_v13 = vadd.f32 %v475_v11, %v332_v12 }
 0x140   : > { %v514_v14 = vpop.f32.mrf.mxu0 }
 0x141   : > { %v338_v15 = vrot.slane %v333_v13, 4 }
 0x142   : > { %v335_v16 = vpop.f32.mrf.mxu0 }
 0x143   : > { %v339_v17 = vmax.f32 %v333_v13, %v338_v15  ;;  %v345_v18 = vmin.f32 %v333_v13, %v338_v15 }
 0x144   : > { %v515_v19 = vpop.f32.mrf.mxu0 }
 0x145   : > { %v340_v20 = vrot.slane %v339_v17, 2  ;;  %v346_v21 = vrot.slane %v345_v18, 2 }
 0x147   : > { %v341_v22 = vmax.f32 %v339_v17, %v340_v20  ;;  %v347_v23 = vmin.f32 %v345_v18, %v346_v21 }
 0x149   : > { %v342_v24 = vrot.slane %v341_v22, 1  ;;  %v348_v25 = vrot.slane %v347_v23, 1 }
 0x14b   : > { %v349_v27 = vmin.f32 %v347_v23, %v348_v25  ;;  %v343_v28 = vmax.f32 %v341_v22, %v342_v24 }
 0x14d   : > { %v350_v29 = vsub.f32 0.0, %v349_v27 }
 0x14f   : > { %v351_v31 = vmax.f32 %v343_v28, %v350_v29  ;;  %vm352_vm1 = vcmp.ge.f32.partialorder %v343_v28, %v350_v29 }
 0x150   : > { %v353_v32 = vsel %vm352_vm1, %v343_v28, %v349_v27 }
 0x151   : > { %vm356_vm2 = vcmp.gt.f32.partialorder %v351_v31, %v355_v30 }
 0x152   : > { %v357_v33 = vsel %vm356_vm2, %v353_v32, %v354_v26 }
 0x153   : > { %358 = vst [vmem:[%s1003_s18] sm:$0x1] %v357_v33 }
 0x154   : > { %709 = shalt.err (!%p706_p6)
}
 0x155   : > { %s710_s5 = scalar_lea.hbm %s1018_s24, 16  ;;  %s714_s27 = scalar_lea.hbm %s1108_s30, 32 }
 0x156   : > { %p711_p9 = scmp.ne.s32.totalorder %s1018_s24, %s710_s5  ;;  %p715_p2 = scmp.lt.s32.totalorder %s1018_s24, %s1108_s30 }
 0x157   : > { %p716_p0 = scmp.lt.s32.totalorder %s714_s27, %s710_s5 }
 0x158   : > { %p712_p10 = pnand %p711_p9, %p1109_p4 }
 0x159   : > { %p717_p11 = por %p716_p0, %p715_p2 }
 0x15a   : > { %p713_p12 = pneg %p712_p10 }
 0x15c   : > { %p718_p1 = pnand %p717_p11, %p713_p12 }
 0x15e   : > { %721 = shalt.err (!%p718_p1)
}
 0x15f   : > { %522 = dma.vmem_to_hbm [thread:$0]  (%p1109_p4), %s373_s9, 16, %s1018_s24, %s360_s3  }
 0x160 PF: > { %s1110_s29 = sld [smem:[#allocation11_spill]]  ;;  %p539_p13 = scmp.ge.s32.totalorder %s820_s22, 2 }
 0x161   : > { %s1111_s6 = sld [smem:[#allocation16_spill]] }
 0x166   : > { %s384_s8 = sand.u32 1, %s1110_s29  }
 0x167   : > { %p1112_p3 = scmp.ne.s32.totalorder %s1111_s6, 0  ;;  %s385_s15 = scalar_lea.sflag [#allocation4], %s384_s8 }
 0x169   : > { %p533_p5 = pnand %p539_p13, %p1112_p3 }
 0x16b   : > { %p534_p7 = pneg %p533_p5 }
 0x16d   : > { %775 = dma.done.wait (%p534_p7), %s385_s15, 16  }
 0x16e   : > { %777 = vsyncadd (%p534_p7), %s385_s15, 4294967280  ;;  %s20_s22 = sadd.s32 1, %s820_s22   ;;  %s1113_s18 = sld [smem:[#allocation14_spill]] }
 0x16f   : > { %p17_p8 = scmp.ge.s32.totalorder %s20_s22, 6   ;;  %s1114_s12 = smov %s784_s13 }
 0x170   : > { %s1115_s13 = smov %s788_s14  ;;  %s1116_s14 = smov %s966_s20 }
 0x171   : > { %s1117_s15 = smov %s796_s16  ;;  %s1118_s16 = smov %s800_s17 }
 0x172   : > { %s1119_s17 = smov %s969_s28  ;;  %s1120_s19 = smov %s816_s21 }
 0x173   : > { %s1121_s20 = smov %s1124_s10  ;;  %s1122_s21 = smov %s1128_s11 }
 0x174   :  { %19 = sbr.rel (!%p17_p8) target bundleno = 14 (0xe), region = 85 }
 0x179   :  { %389 = vsyncpa [#allocation3], 1 }
 0x17a   :  { %391 = vsyncpa [#allocation3 + $0x1], 1 }
 0x17b   :  { %392 = vsyncpa [#allocation6], 1 }
 0x17c   :  { %393 = vsyncpa [#allocation4], 1 }
 0x17d   :  { %395 = vsyncpa [#allocation4 + $0x1], 1 }

</bundles_post_ra>
